<compile_context>
chip_gen: v7x
topology: tpu7x:2x2x1
jax: 0.10.0
libtpu: 0.0.40
codegen_flags: <defaults>
</compile_context>

<pallas_src>
import functools

import jax
import jax.numpy as jnp
from jax.experimental import pallas as pl
from jax.experimental.pallas import tpu as pltpu

_MiB = 1024 * 1024


def _uniform_distance_kernel(beta_ref, gamma_ref, out_ref, *, block_size):
    # beta_ref / gamma_ref: (H,) float32 in SMEM (full, untiled).
    # out_ref: (row_tile, col_tile) VMEM block for the current (head, row, col) step.
    h = pl.program_id(0)
    mask = (beta_ref[h] + gamma_ref[h]) * (0.5 * block_size)
    out_ref[...] = jnp.full(out_ref.shape, mask, dtype=out_ref.dtype)


def _vmem_budget_and_cap():
    """Generation-aware VMEM capacity and double-buffered output-block budget."""
    try:
        cap = int(pltpu.get_tpu_info().vmem_capacity_bytes)
    except Exception:
        cap = 64 * _MiB  # conservative (v7x per-TC VMEM)
    if cap >= 96 * _MiB:         # v5e / v6e: 128 MiB VMEM
        budget = 48 * _MiB
    else:                        # v7x: 64 MiB physical, 32 MiB scoped default
        budget = 24 * _MiB
    return budget, cap


def _choose_tiles(row_cnt, col_cnt, budget_bytes):
    """Largest (row_tile, col_tile) whose double-buffered f32 block fits budget."""
    col_tile = col_cnt
    # double-buffered f32 block: 2 * row_tile * col_tile * 4 bytes
    row_budget = budget_bytes // max(8 * col_tile, 1)
    if row_budget >= row_cnt:
        return row_cnt, col_tile                  # whole per-head slab in one step
    if row_budget >= 8:
        return (row_budget // 8) * 8, col_tile    # sublane-aligned row tile
    # Even 8 rows x full columns exceed budget (huge col_cnt): tile the lane axis.
    row_tile = 8
    col_budget = budget_bytes // (8 * row_tile)
    col_tile = max(128, (col_budget // 128) * 128)
    return row_tile, col_tile


def uniform_distance_matrix(beta, gamma, *, row_cnt, col_cnt, block_size,
                            force_pallas=False, small_bytes_threshold=1 * _MiB):
    """Returns (H, row_cnt, col_cnt) float32: (beta+gamma)/2 * block_size per head."""
    num_heads = beta.shape[0]
    beta = beta.astype(jnp.float32)
    gamma = gamma.astype(jnp.float32)

    total_bytes = num_heads * row_cnt * col_cnt * 4
    if (not force_pallas) and total_bytes < small_bytes_threshold:
        # Tiny output: Pallas launch overhead dominates and XLA will fuse the
        # broadcast into the consumer (may never even materialize it).
        mask = (beta + gamma) * (0.5 * block_size)
        return jnp.broadcast_to(mask[:, None, None], (num_heads, row_cnt, col_cnt))

    # Lane-dense layout: the fill value is constant per head, so the row/col
    # structure is irrelevant inside the kernel.  If col_cnt is not a multiple
    # of 128 but the per-head slab is, compute on a lane-dense view and reshape
    # back (free for a contiguous buffer).
    out_rows, out_cols = row_cnt, col_cnt
    if col_cnt % 128 != 0 and (row_cnt * col_cnt) % 128 == 0:
        out_cols = 128
        out_rows = (row_cnt * col_cnt) // 128
    # TODO(synk): if neither col_cnt nor row_cnt*col_cnt is a multiple of 128,
    # stores are masked (vst.msk); pad the trailing dim in the caller if it matters.

    budget, vmem_cap = _vmem_budget_and_cap()
    row_tile, col_tile = _choose_tiles(out_rows, out_cols, budget)
    block_bytes = row_tile * col_tile * 4
    vmem_limit = min(vmem_cap, max(2 * block_bytes + 4 * _MiB, 16 * _MiB))

    grid = (num_heads, pl.cdiv(out_rows, row_tile), pl.cdiv(out_cols, col_tile))

    kernel = functools.partial(_uniform_distance_kernel, block_size=block_size)

    def make_call(dim_semantics):
        return pl.pallas_call(
            kernel,
            out_shape=jax.ShapeDtypeStruct((num_heads, out_rows, out_cols),
                                           jnp.float32),
            grid_spec=pltpu.PrefetchScalarGridSpec(
                num_scalar_prefetch=0,
                grid=grid,
                in_specs=[
                    pl.BlockSpec(memory_space=pltpu.MemorySpace.SMEM),  # beta  (H,)
                    pl.BlockSpec(memory_space=pltpu.MemorySpace.SMEM),  # gamma (H,)
                ],
                out_specs=pl.BlockSpec(
                    (pl.Squeezed(), row_tile, col_tile),
                    lambda h, r, c: (h, r, c),
                ),
            ),
            compiler_params=pltpu.CompilerParams(
                dimension_semantics=dim_semantics,
                vmem_limit_bytes=vmem_limit,
            ),
        )

    # CORE_PARALLEL on the head axis is what actually shards grid steps across
    # v7x's two TensorCores (plain PARALLEL measured as a no-op).  Fall back to
    # PARALLEL if this chip / JAX build rejects it.
    candidates = []
    if num_heads >= 2:
        candidates.append((pltpu.CORE_PARALLEL, pltpu.PARALLEL, pltpu.PARALLEL))
    candidates.append((pltpu.PARALLEL, pltpu.PARALLEL, pltpu.PARALLEL))

    out = None
    last_err = None
    for sems in candidates:
        try:
            out = jax.block_until_ready(make_call(sems)(beta, gamma))
            break
        except Exception as e:  # e.g. CORE_PARALLEL unsupported on this generation
            last_err = e
            out = None
    if out is None:
        raise last_err

    if (out_rows, out_cols) != (row_cnt, col_cnt):
        out = out.reshape(num_heads, row_cnt, col_cnt)
    return out


if __name__ == "__main__":
    # Module hyperparameters (small, consistent with the forward).
    num_attention_heads = 4
    row_cnt = 16
    col_cnt = 128
    block_size = 8

    # Deterministic parameter init: nn.init.uniform_ -> U[0, 1).
    key = jax.random.PRNGKey(0)
    kb, kg = jax.random.split(key)
    beta = jax.random.uniform(kb, (num_attention_heads,), dtype=jnp.float32)
    gamma = jax.random.uniform(kg, (num_attention_heads,), dtype=jnp.float32)

    # Reference (plain JAX) of the forward semantics.
    mask = (beta + gamma) / 2.0 * block_size
    ref = jnp.ones((num_attention_heads, row_cnt, col_cnt), jnp.float32) * mask[:, None, None]

    # 1) Pallas path (forced, so the kernel itself is exercised at this tiny shape).
    out_pallas = uniform_distance_matrix(
        beta, gamma, row_cnt=row_cnt, col_cnt=col_cnt, block_size=block_size,
        force_pallas=True,
    )
    out_pallas = jax.block_until_ready(out_pallas)

    # 2) Default wrapper (small-shape XLA fast path).
    out_fast = jax.block_until_ready(uniform_distance_matrix(
        beta, gamma, row_cnt=row_cnt, col_cnt=col_cnt, block_size=block_size,
    ))

    assert out_pallas.shape == (num_attention_heads, row_cnt, col_cnt)
    assert out_pallas.dtype == jnp.float32
    assert jnp.allclose(out_pallas, ref, rtol=1e-6, atol=1e-6)
    assert jnp.allclose(out_fast, ref, rtol=1e-6, atol=1e-6)

    print("KERNEL_OK")
</pallas_src>

<mosaic_0001>
module attributes {stable_mosaic.version = 11 : i64} {
  func.func @_uniform_distance_kernel(%arg0: i32, %arg1: i32, %arg2: i32, %arg3: memref<4xf32, #tpu.memory_space<smem>>, %arg4: memref<4xf32, #tpu.memory_space<smem>>, %arg5: memref<1x16x128xf32, #tpu.memory_space<vmem>>) attributes {dimension_semantics = [#tpu.dimension_semantics<core_parallel>, #tpu.dimension_semantics<parallel>, #tpu.dimension_semantics<parallel>], iteration_bounds = array<i64: 4, 1, 1>, scalar_prefetch = 0 : i64, scratch_operands = 0 : i64, tpu.core_type = #tpu.core_type<tc>, window_params = [{transform_indices = @transform_0, window_bounds = array<i64: 4>}, {transform_indices = @transform_1, window_bounds = array<i64: 4>}, {transform_indices = @transform_2, window_bounds = array<i64: 1, 16, 128>}]} {
    %0 = arith.index_cast %arg0 : i32 to index
    %1 = memref.load %arg3[%0] : memref<4xf32, #tpu.memory_space<smem>>
    %2 = arith.index_cast %arg0 : i32 to index
    %3 = memref.load %arg4[%2] : memref<4xf32, #tpu.memory_space<smem>>
    %4 = arith.addf %1, %3 : f32
    %cst = arith.constant 4.000000e+00 : f32
    %5 = arith.mulf %4, %cst : f32
    %6 = vector.broadcast %5 : f32 to vector<16x128xf32>
    %c0 = arith.constant 0 : index
    %c0_0 = arith.constant 0 : index
    %c0_1 = arith.constant 0 : index
    %7 = vector.load %arg5[%c0, %c0_0, %c0_1] : memref<1x16x128xf32, #tpu.memory_space<vmem>>, vector<1x16x128xf32>
    %8 = vector.shape_cast %7 : vector<1x16x128xf32> to vector<16x128xf32>
    %9 = vector.shape_cast %6 : vector<16x128xf32> to vector<1x16x128xf32>
    tpu.vector_store %arg5[%c0, %c0_0, %c0_1], %9 {strides = array<i32>} : memref<1x16x128xf32, #tpu.memory_space<vmem>>, vector<1x16x128xf32>,
    return
  }
  func.func @transform_0(%arg0: i32, %arg1: i32, %arg2: i32) -> i32 {
    %c0_i32 = arith.constant 0 : i32
    %c0_i32_0 = arith.constant 0 : i32
    return %c0_i32 : i32
  }
  func.func @transform_1(%arg0: i32, %arg1: i32, %arg2: i32) -> i32 {
    %c0_i32 = arith.constant 0 : i32
    %c0_i32_0 = arith.constant 0 : i32
    return %c0_i32 : i32
  }
  func.func @transform_2(%arg0: i32, %arg1: i32, %arg2: i32) -> (i32, i32, i32) {
    %c0_i32 = arith.constant 0 : i32
    return %arg0, %arg1, %arg2 : i32, i32, i32
  }
}

module attributes {stable_mosaic.version = 11 : i64} {
  func.func @_uniform_distance_kernel(%arg0: i32, %arg1: i32, %arg2: i32, %arg3: memref<4xf32, #tpu.memory_space<smem>>, %arg4: memref<4xf32, #tpu.memory_space<smem>>, %arg5: memref<1x16x128xf32, #tpu.memory_space<vmem>>) attributes {dimension_semantics = [#tpu.dimension_semantics<parallel>, #tpu.dimension_semantics<parallel>, #tpu.dimension_semantics<parallel>], iteration_bounds = array<i64: 4, 1, 1>, scalar_prefetch = 0 : i64, scratch_operands = 0 : i64, tpu.core_type = #tpu.core_type<tc>, window_params = [{transform_indices = @transform_0, window_bounds = array<i64: 4>}, {transform_indices = @transform_1, window_bounds = array<i64: 4>}, {transform_indices = @transform_2, window_bounds = array<i64: 1, 16, 128>}]} {
    %0 = arith.index_cast %arg0 : i32 to index
    %1 = memref.load %arg3[%0] : memref<4xf32, #tpu.memory_space<smem>>
    %2 = arith.index_cast %arg0 : i32 to index
    %3 = memref.load %arg4[%2] : memref<4xf32, #tpu.memory_space<smem>>
    %4 = arith.addf %1, %3 : f32
    %cst = arith.constant 4.000000e+00 : f32
    %5 = arith.mulf %4, %cst : f32
    %6 = vector.broadcast %5 : f32 to vector<16x128xf32>
    %c0 = arith.constant 0 : index
    %c0_0 = arith.constant 0 : index
    %c0_1 = arith.constant 0 : index
    %7 = vector.load %arg5[%c0, %c0_0, %c0_1] : memref<1x16x128xf32, #tpu.memory_space<vmem>>, vector<1x16x128xf32>
    %8 = vector.shape_cast %7 : vector<1x16x128xf32> to vector<16x128xf32>
    %9 = vector.shape_cast %6 : vector<16x128xf32> to vector<1x16x128xf32>
    tpu.vector_store %arg5[%c0, %c0_0, %c0_1], %9 {strides = array<i32>} : memref<1x16x128xf32, #tpu.memory_space<vmem>>, vector<1x16x128xf32>,
    return
  }
  func.func @transform_0(%arg0: i32, %arg1: i32, %arg2: i32) -> i32 {
    %c0_i32 = arith.constant 0 : i32
    %c0_i32_0 = arith.constant 0 : i32
    return %c0_i32 : i32
  }
  func.func @transform_1(%arg0: i32, %arg1: i32, %arg2: i32) -> i32 {
    %c0_i32 = arith.constant 0 : i32
    %c0_i32_0 = arith.constant 0 : i32
    return %c0_i32 : i32
  }
  func.func @transform_2(%arg0: i32, %arg1: i32, %arg2: i32) -> (i32, i32, i32) {
    %c0_i32 = arith.constant 0 : i32
    return %arg0, %arg1, %arg2 : i32, i32, i32
  }
}

</mosaic_0001>

<bundles_post_ra>
// kernel: tpu_custom_call.1
= control target key start
LH: loop header
LB: loop body
LE: loop exit
PB: predicated region body
PF: predicated region fallthrough
CT: control target
= control target key end

     0   :  { %7 = vsyncpa [#allocation4], 0  ;;  %s672_s0 = inlined_call_operand.hbm [shape: f32[4], index: 0, kind: input, shape index: {}]   ;;  %s673_s1 = inlined_call_operand.vmem [shape: f32[4], index: 1, kind: input, shape index: {}]   ;;  %s674_s2 = inlined_call_operand.hbm [shape: f32[4,16,128], index: 2, kind: output, shape index: {}]  }
   0x1   :  { %8 = vsyncpa [#allocation5], 0 }
   0x2   :  { %9 = vsyncpa [#allocation3], 0 }
   0x3   :  { %11 = vsyncpa [#allocation3 + $0x1], 0  ;;  %s513_s9 = smov 0   ;;  %s515_s10 = smov 0  }
   0x4   :  { %s517_s11 = smov 0   ;;  %s519_s12 = smov 0  }
   0x5   :  { %s521_s13 = smov 0   ;;  %s523_s14 = smov 0  }
   0x6 LB: > { %s284_s15 = sadd.s32 4294967295, %s491_s14   ;;  %s285_s16 = sadd.s32 4294967294, %s491_s14   ;;  %s491_s14 = sphi %s523_s14, %s17_s14   ;;  %s487_s13 = sphi %s521_s13, %s687_s13   ;;  %s483_s12 = sphi %s519_s12, %s686_s12   ;;  %s479_s11 = sphi %s517_s11, %s685_s11   ;;  %s475_s10 = sphi %s515_s10, %s684_s10   ;;  %s471_s9 = sphi %s513_s9, %s683_s9  }
   0x7   : > { %s36_s17 = sadd.s32 1, %s487_s13  ;;  %s89_s18 = sadd.s32 1, %s479_s11 }
   0x8   : > { %p38_p0 = scmp.ge.s32.totalorder %s36_s17, 4  ;;  %p99_p1 = scmp.ne.s32.totalorder %s479_s11, %s475_s10 }
   0x9   : > { %p100_p2 = scmp.eq.s32.totalorder %s284_s15, 3  ;;  %p105_p3 = scmp.ne.s32.totalorder %s475_s10, %s471_s9 }
   0xa   : > { %s689_s17 = smov (%p38_p0, %s36_s17), 0  ;;  %p106_p5 = scmp.eq.s32.totalorder %s285_s16, 3 }
   0xb   : > { %p553_p4 = por %p100_p2, %p99_p1  ;;  %s82_s20 = ssub.s32 %s487_s13, %s689_s17 }
   0xc   : > { %p286_p6 = scmp.ge.s32.totalorder %s491_s14, 1  ;;  %p87_p7 = scmp.eq.s32.totalorder %s82_s20, 0 }
   0xd   : > { %s676_s19 = scalar_select %p553_p4, 1, 0 }
   0xe   : > { %p560_p8 = por %p106_p5, %p105_p3  ;;  %p113_p9 = scmp.lt.s32.totalorder %s491_s14, 5 }
   0xf   : > { %s566_s22 = scalar_select %p87_p7, %s479_s11, %s89_s18  }
  0x10   : > { %s677_s21 = scalar_select %p560_p8, 1, 0 }
  0x11   : > { %p568_p10 = pnand %p286_p6, %p113_p9  ;;  %p572_p11 = scmp.eq.s32.totalorder %s284_s15, 0 }
  0x12   : > { %s135_s27 = sshll.u32 %s673_s1, 4  ;;  %s377_s3 = scalar_lea.hbm %s672_s0, 16  ;;  %s136_s27 = int_to_ptr.vmem [resolvable:$true] %s135_s27 }
  0x13   : > { %p309_p12 = pneg %p568_p10  ;;  %p378_p0 = scmp.ne.s32.totalorder %s672_s0, %s377_s3 }
  0x14   : > { %p384_p5 = scmp.lt.u32.totalorder %s377_s3, %s672_s0 }
  0x15   : > { %p583_p13 = pnand %p572_p11, %p309_p12 }
  0x17   : > { %p379_p1 = pneg %p583_p13 }
  0x19   : > { %p380_p2 = pnand %p379_p1, %p378_p0 }
  0x1b   : > { %p381_p3 = pneg %p380_p2 }
  0x1d   : > { %p386_p6 = pnand %p384_p5, %p381_p3 }
  0x1f   : > { %389 = shalt.err (!%p386_p6)
}
  0x20   : > { %s493_s8 = smov [#allocation2]   ;;  %s390_s18 = scalar_lea.vmem %s136_s27, 16 }
  0x21   : > { %312 = dma.hbm_to_smem (!%p583_p13), %s672_s0, 16, %s493_s8, [#allocation4]  }
  0x22   : > { %p391_p7 = scmp.ne.s32.totalorder %s136_s27, %s390_s18  ;;  %p398_p8 = scmp.lt.s32.totalorder %s136_s27, %s136_s27 }
  0x23   : > { %p399_p0 = scmp.lt.s32.totalorder %s390_s18, %s390_s18 }
  0x24   : > { %p393_p9 = pnand %p391_p7, %p379_p1 }
  0x25   : > { %p400_p2 = por %p399_p0, %p398_p8 }
  0x26   : > { %p394_p12 = pneg %p393_p9 }
  0x28   : > { %p401_p4 = pnand %p400_p2, %p394_p12 }
  0x2a   : > { %404 = shalt.err (!%p401_p4)
}
  0x2b   : > { %s494_s20 = smov [#allocation6]   ;;  %148 = sbr.rel (%p568_p10) target bundleno = 86 (0x56), region = 28 }
  0x2c   : > { %315 = dma.vmem_to_smem (!%p583_p13), %s136_s27, 16, %s494_s20, [#allocation5]  }
  0x32   : > { %458 = dma.done.wait (%p572_p11), [#allocation4], 16  }
  0x33   : > { %460 = vsyncadd (%p572_p11), [#allocation4], 4294967280 }
  0x34   : > { %462 = dma.done.wait (%p572_p11), [#allocation5], 16  }
  0x35   : > { %464 = vsyncadd (%p572_p11), [#allocation5], 4294967280 }
  0x36   : > { %158 = sfence }
  0x37   : > { %s167_s25 = sand.u32 1, %s475_s10   ;;  %s171_s23 = sld [smem:[#allocation2 + %s483_s12]] }
  0x38   : > { %s292_s26 = sshll.u32 %s167_s25, 4  ;;  %s172_s27 = sld [smem:[#allocation6 + %s483_s12]] }
  0x39   : > { %s169_s28 = scalar_lea.vmem [#allocation7], %s292_s26  ;;  %s298_s30 = sshll.u32 %s483_s12, 8 }
  0x3a   : > { %s195_s29 = sshll.u32 %s169_s28, 4  ;;  %s624_s6 = scalar_lea.hbm %s674_s2, %s298_s30  ;;  %s619_s29 = int_to_ptr.vmem [resolvable:$true] %s195_s29 }
  0x3b   : > { %s626_s7 = scalar_lea.sflag [#allocation3], %s167_s25  ;;  %s405_s8 = scalar_lea.vmem %s619_s29, 256 }
  0x3c   : > { %p406_p4 = scmp.ne.s32.totalorder %s619_s29, %s405_s8  ;;  %p681_p8 = scmp.ne.s32.totalorder %s676_s19, 0 }
  0x3d   : > { %s495_s12 = smov [#allocation7]  }
  0x3e   : > { %s173_s3 = sadd.f32 %s172_s27, %s171_s23  ;;  %p407_p10 = pnand %p406_p4, %p681_p8 }
  0x3f   : > { %s409_s15 = sshll.u32 %s495_s12, 4  ;;  %s410_s15 = int_to_ptr.vmem [resolvable:$false] %s409_s15 }
  0x40   : > { %s174_s24 = smul.f32 4.0, %s173_s3  ;;  %p408_p11 = pneg %p407_p10 }
  0x41   : > { %s411_s16 = scalar_lea.vmem %s410_s15, 512  ;;  %p412_p13 = scmp.lt.s32.totalorder %s619_s29, %s410_s15 }
  0x42   : > { %v175_v0 = vstv %s174_s24  ;;  %p413_p1 = scmp.lt.s32.totalorder %s411_s16, %s405_s8 }
  0x43   : > { %176 = vst [vmem:[%s169_s28] sm:$0xff] %v175_v0  ;;  %177 = vst [vmem:[%s169_s28 + $0x8] sm:$0xff] %v175_v0 }
  0x44   : > { %p414_p3 = por %p413_p1, %p412_p13 }
  0x46   : > { %p415_p5 = pnand %p414_p3, %p408_p11 }
  0x48   : > { %418 = shalt.err (!%p415_p5)
}
  0x49   : > { %s419_s18 = scalar_lea.hbm %s624_s6, 256  ;;  %s423_s23 = scalar_lea.hbm %s674_s2, 1024 }
  0x4a   : > { %p420_p6 = scmp.ne.s32.totalorder %s624_s6, %s419_s18  ;;  %p424_p12 = scmp.lt.u32.totalorder %s624_s6, %s674_s2 }
  0x4b   : > { %p425_p0 = scmp.lt.u32.totalorder %s423_s23, %s419_s18  ;;  %p427_p4 = scmp.lt.u32.totalorder %s419_s18, %s624_s6 }
  0x4c   : > { %p421_p7 = pnand %p420_p6, %p681_p8 }
  0x4d   : > { %p426_p2 = por %p425_p0, %p424_p12 }
  0x4e   : > { %p422_p9 = pneg %p421_p7 }
  0x4f   : > { %p428_p10 = por %p427_p4, %p426_p2 }
  0x51   : > { %p429_p11 = pnand %p428_p10, %p422_p9 }
  0x53   : > { %432 = shalt.err (!%p429_p11)
}
  0x54   : > { %s496_s28 = smov 128   ;;  %s497_s30 = smov 8  }
  0x55   : > { %307 = dma.vmem_to_hbm [thread:$0]  (%p681_p8), %s619_s29, 256, %s624_s6, %s626_s7, %s496_s28, %s496_s28, %s497_s30  }
  0x56 PF: > { %p324_p13 = scmp.ge.s32.totalorder %s491_s14, 2  ;;  %s210_s3 = sand.u32 1, %s471_s9  }
  0x57   : > { %p682_p1 = scmp.ne.s32.totalorder %s677_s21, 0  ;;  %s211_s24 = scalar_lea.sflag [#allocation3], %s210_s3 }
  0x59   : > { %p317_p3 = pnand %p324_p13, %p682_p1 }
  0x5b   : > { %466 = dma.done.wait (!%p317_p3), %s211_s24, 256  }
  0x5c   : > { %468 = vsyncadd (!%p317_p3), %s211_s24, 4294967040  ;;  %s17_s14 = sadd.s32 1, %s491_s14   ;;  %s683_s9 = smov %s475_s10 }
  0x5d   : > { %p14_p5 = scmp.ge.s32.totalorder %s17_s14, 6   ;;  %s684_s10 = smov %s479_s11 }
  0x5e   : > { %s685_s11 = smov %s566_s22  ;;  %s686_s12 = smov %s487_s13 }
  0x5f   : > { %s687_s13 = smov %s689_s17  ;;  %16 = sbr.rel (!%p14_p5) target bundleno = 6 (0x6), region = 70 }
  0x66   :  { %216 = vsyncpa [#allocation3], 1 }
  0x67   :  { %218 = vsyncpa [#allocation3 + $0x1], 1 }
  0x68   :  { %219 = vsyncpa [#allocation4], 1 }
  0x69   :  { %221 = vsyncpa [#allocation4 + $0x1], 1 }
  0x6a   :  { %222 = vsyncpa [#allocation5], 1 }
  0x6b   :  { %224 = vsyncpa [#allocation5 + $0x1], 1 }

</bundles_post_ra>
